<compile_context>
chip_gen: v7x
topology: tpu7x:2x2x1
jax: 0.10.0
libtpu: 0.0.40
codegen_flags: <defaults>
</compile_context>

<pallas_src>
import jax
import jax.numpy as jnp
from jax.experimental import pallas as pl
from jax.experimental.pallas import tpu as pltpu


def _conv1x1_kernel(w_ref, x_ref, o_ref):
    # w_ref: (Cout, Cin)   -- resident (constant index_map -> not re-DMA'd)
    # x_ref: (Cin, T_hw)   -- Cin on sublanes, spatial on lanes (dense)
    # o_ref: (Cout, T_hw)  -- lane-dense output -> unmasked vst
    o_ref[...] = jnp.dot(
        w_ref[...], x_ref[...], preferred_element_type=jnp.float32
    ).astype(o_ref.dtype)


def _round_up(x, m):
    return (x + m - 1) // m * m


def _vmem_budget_bytes():
    """Generation-aware VMEM budget: ~75% of physical VMEM.

    ~48 MiB on v7x (64 MiB physical), ~96 MiB on v5e/v6e (128 MiB physical).
    Falls back to the conservative v7x figure if the query is unavailable.
    """
    cap = None
    try:
        cap = getattr(pltpu.get_tpu_info(), "vmem_capacity_bytes", None)
    except Exception:
        cap = None
    if not cap:
        cap = 64 * 1024 * 1024
    return (int(cap) * 3) // 4


def _pick_spatial_tile(hw, cin, cout, n_batch, vmem_budget_bytes):
    """Spatial tile T (multiple of 128 lanes) for the HBM-bound 1x1 conv.

    Constraints, in order:
      * fit double-buffered x + out tiles (sublane-padded, f32) + weight in VMEM
      * target ~4 MiB of x per grid step (DMA >> per-step fixed overhead)
      * keep >= 4 total grid blocks (>=2 per v7x TensorCore, pipeline overlap)
      * cap at 32768 lanes
    """
    LANE = 128
    if hw <= LANE:
        return hw  # full-extent block along spatial: always a legal layout

    NBUF = 2                 # Pallas double-buffers each pipelined BlockSpec
    MIN_TOTAL_BLOCKS = 4     # megacore (v7x) + pipeline overlap

    cin_p = _round_up(cin, 8)
    cout_p = _round_up(cout, 8)

    # Resident weight buffers + slack for compiler-internal scratch.
    weight_bytes = NBUF * cout_p * _round_up(cin, LANE) * 4
    slack_bytes = 2 * 1024 * 1024
    budget = max(vmem_budget_bytes - weight_bytes - slack_bytes, 8 * 1024 * 1024)

    # VMEM per lane of T: double-buffered x tile + out tile, f32, sublane-padded.
    bytes_per_lane = NBUF * (cin_p + cout_p) * 4
    t_vmem = max((budget // bytes_per_lane) // LANE * LANE, LANE)

    # Bytes-per-step target for the dominant (x) stream.
    target_x_bytes = 4 * 1024 * 1024
    t_target = max((target_x_bytes // (cin_p * 4)) // LANE * LANE, LANE)

    # Keep enough grid blocks for megacore sharding and pipeline overlap.
    spatial_blocks_wanted = max(-(-MIN_TOTAL_BLOCKS // n_batch), 1)
    t_grid = max((hw // spatial_blocks_wanted) // LANE * LANE, LANE)

    t = min(t_vmem, t_target, t_grid, 32768, _round_up(hw, LANE))
    return max(t, LANE)


def out_block_forward(x_nchw, weight_oi):
    """Forward of OutBlock: Conv2d(Cin, Cout, kernel_size=1, bias=False).

    x_nchw:    (N, Cin, H, W) float32
    weight_oi: (Cout, Cin) float32  (1x1 conv weight with trailing (1,1) squeezed)
    returns:   (N, Cout, H, W) float32
    """
    N, Cin, H, W = x_nchw.shape
    Cout = weight_oi.shape[0]
    HW = H * W

    # Free reshape: NCHW -> (N, Cin, HW).  No transposes anywhere.
    x3 = x_nchw.reshape(N, Cin, HW)

    vmem_budget = _vmem_budget_bytes()
    T = _pick_spatial_tile(HW, Cin, Cout, N, vmem_budget)
    grid = (N, pl.cdiv(HW, T))  # ragged last block is padded/masked by Pallas

    cost = pl.CostEstimate(
        flops=2 * N * Cout * Cin * HW,
        bytes_accessed=4 * (N * Cin * HW + N * Cout * HW + Cout * Cin),
        transcendentals=0,
    )

    out3 = pl.pallas_call(
        _conv1x1_kernel,
        out_shape=jax.ShapeDtypeStruct((N, Cout, HW), x_nchw.dtype),
        grid_spec=pltpu.PrefetchScalarGridSpec(
            num_scalar_prefetch=0,
            grid=grid,
            in_specs=[
                # Weight: full array, constant block index -> stays resident.
                pl.BlockSpec((Cout, Cin), lambda n, s: (0, 0)),
                # x: batch dim squeezed, (Cin, T) tile -> spatial on lanes.
                pl.BlockSpec((None, Cin, T), lambda n, s: (n, 0, s)),
            ],
            out_specs=pl.BlockSpec((None, Cout, T), lambda n, s: (n, 0, s)),
        ),
        compiler_params=pltpu.CompilerParams(
            # Each grid point writes a distinct output block -> both axes parallel
            # (megacore sharding on v7x).
            dimension_semantics=("parallel", "parallel"),
            # Same generation-aware number used to size the tiles.
            vmem_limit_bytes=vmem_budget,
        ),
        cost_estimate=cost,
    )(weight_oi, x3)

    # Free reshape back to NCHW.
    return out3.reshape(N, Cout, H, W)


if __name__ == "__main__":
    key = jax.random.PRNGKey(0)
    kx, kw = jax.random.split(key)

    N, Cin, Cout, H, W = 2, 4, 8, 16, 16

    x = jax.random.normal(kx, (N, Cin, H, W), dtype=jnp.float32)
    # Deterministic synthetic weight, matches Conv2d(Cin, Cout, 1).weight
    # squeezed over the trailing (1, 1) kernel dims.
    weight = jax.random.normal(kw, (Cout, Cin), dtype=jnp.float32) * 0.1

    y = out_block_forward(x, weight)
    y = jax.block_until_ready(y)

    # Reference: plain-JAX 1x1 conv.
    y_ref = jnp.einsum("nchw,oc->nohw", x, weight)
    assert y.shape == (N, Cout, H, W)
    assert jnp.allclose(y, y_ref, atol=1e-5, rtol=1e-5)

    print("KERNEL_OK")
</pallas_src>

<mosaic_0001>
module attributes {stable_mosaic.version = 11 : i64} {
  func.func @_conv1x1_kernel(%arg0: i32, %arg1: i32, %arg2: memref<8x4xf32, #tpu.memory_space<vmem>>, %arg3: memref<1x4x128xf32, #tpu.memory_space<vmem>>, %arg4: memref<1x8x128xf32, #tpu.memory_space<vmem>>) attributes {dimension_semantics = [#tpu.dimension_semantics<parallel>, #tpu.dimension_semantics<parallel>], iteration_bounds = array<i64: 2, 2>, scalar_prefetch = 0 : i64, scratch_operands = 0 : i64, tpu.core_type = #tpu.core_type<tc>, window_params = [{pipeline_mode = #tpu.pipeline_mode<synchronous>, transform_indices = @transform_0, window_bounds = array<i64: 8, 4>}, {transform_indices = @transform_1, window_bounds = array<i64: 1, 4, 128>}, {transform_indices = @transform_2, window_bounds = array<i64: 1, 8, 128>}]} {
    %c0 = arith.constant 0 : index
    %c0_0 = arith.constant 0 : index
    %0 = vector.load %arg2[%c0, %c0_0] : memref<8x4xf32, #tpu.memory_space<vmem>>, vector<8x4xf32>
    %c0_1 = arith.constant 0 : index
    %c0_2 = arith.constant 0 : index
    %c0_3 = arith.constant 0 : index
    %1 = vector.load %arg3[%c0_1, %c0_2, %c0_3] : memref<1x4x128xf32, #tpu.memory_space<vmem>>, vector<1x4x128xf32>
    %2 = vector.shape_cast %1 : vector<1x4x128xf32> to vector<4x128xf32>
    %cst = arith.constant dense<0.000000e+00> : vector<8x128xf32>
    %3 = tpu.matmul %0, %2, %cst {dimension_numbers = #tpu.dot_dimension_numbers<[1], [0], [0], [1], [0, 0, 1, 1], [], []>} : vector<8x4xf32>, vector<4x128xf32>, vector<8x128xf32> -> vector<8x128xf32>
    %c0_4 = arith.constant 0 : index
    %c0_5 = arith.constant 0 : index
    %c0_6 = arith.constant 0 : index
    %4 = vector.load %arg4[%c0_4, %c0_5, %c0_6] : memref<1x8x128xf32, #tpu.memory_space<vmem>>, vector<1x8x128xf32>
    %5 = vector.shape_cast %4 : vector<1x8x128xf32> to vector<8x128xf32>
    %6 = vector.shape_cast %3 : vector<8x128xf32> to vector<1x8x128xf32>
    tpu.vector_store %arg4[%c0_4, %c0_5, %c0_6], %6 {strides = array<i32>} : memref<1x8x128xf32, #tpu.memory_space<vmem>>, vector<1x8x128xf32>,
    return
  }
  func.func @transform_0(%arg0: i32, %arg1: i32) -> (i32, i32) {
    %c0_i32 = arith.constant 0 : i32
    %c0_i32_0 = arith.constant 0 : i32
    %c0_i32_1 = arith.constant 0 : i32
    return %c0_i32, %c0_i32_0 : i32, i32
  }
  func.func @transform_1(%arg0: i32, %arg1: i32) -> (i32, i32, i32) {
    %c0_i32 = arith.constant 0 : i32
    %c0_i32_0 = arith.constant 0 : i32
    return %arg0, %c0_i32, %arg1 : i32, i32, i32
  }
  func.func @transform_2(%arg0: i32, %arg1: i32) -> (i32, i32, i32) {
    %c0_i32 = arith.constant 0 : i32
    %c0_i32_0 = arith.constant 0 : i32
    return %arg0, %c0_i32, %arg1 : i32, i32, i32
  }
}

</mosaic_0001>

<bundles_post_ra>
// kernel: tpu_custom_call.1
= control target key start
LH: loop header
LB: loop body
LE: loop exit
PB: predicated region body
PF: predicated region fallthrough
CT: control target
= control target key end

     0   :  { %7 = vsyncpa [#allocation3], 0  ;;  %s810_s0 = inlined_call_operand.vmem [shape: f32[8,4], index: 0, kind: input, shape index: {}]   ;;  %s811_s1 = inlined_call_operand.hbm [shape: f32[2,4,256], index: 1, kind: input, shape index: {}]   ;;  %s812_s2 = inlined_call_operand.hbm [shape: f32[2,8,256], index: 2, kind: output, shape index: {}]  }
   0x1   :  { %9 = vsyncpa [#allocation3 + $0x1], 0 }
   0x2   :  { %10 = vsyncpa [#allocation4], 0 }
   0x3   :  { %12 = vsyncpa [#allocation4 + $0x1], 0  ;;  %s612_s9 = smov 0   ;;  %s614_s10 = smov 0  }
   0x4   :  { %s616_s11 = smov 0   ;;  %s618_s12 = smov 0  }
   0x5   :  { %s620_s13 = smov 0   ;;  %s622_s14 = smov 0  }
   0x6   :  { %s624_s15 = smov 0   ;;  %s626_s16 = smov 0  }
   0x7 LB: > { %s359_s17 = sadd.s32 4294967295, %s591_s16   ;;  %s360_s18 = sadd.s32 4294967294, %s591_s16   ;;  %s591_s16 = sphi %s626_s16, %s18_s16   ;;  %s587_s15 = sphi %s624_s15, %s829_s15   ;;  %s583_s14 = sphi %s622_s14, %s828_s14   ;;  %s579_s13 = sphi %s620_s13, %s827_s13   ;;  %s575_s12 = sphi %s618_s12, %s826_s12   ;;  %s571_s11 = sphi %s616_s11, %s825_s11   ;;  %s567_s10 = sphi %s614_s10, %s824_s10   ;;  %s563_s9 = sphi %s612_s9, %s823_s9  }
   0x8   : > { %s27_s19 = sadd.s32 1, %s583_s14  ;;  %s30_s20 = sadd.s32 1, %s587_s15 }
   0x9   : > { %p28_p0 = scmp.ge.s32.totalorder %s27_s19, 2  ;;  %s60_s21 = sadd.s32 1, %s571_s11 }
   0xa   : > { %p67_p1 = scmp.ne.s32.totalorder %s571_s11, %s567_s10  ;;  %p68_p2 = scmp.eq.s32.totalorder %s591_s16, 0 }
   0xb   : > { %s831_s19 = smov (%p28_p0, %s27_s19), 0  ;;  %s833_s20 = smov (!%p28_p0, %s30_s20), %s587_s15 }
   0xc   : > { %s56_s22 = ssub.s32 %s583_s14, %s831_s19  ;;  %p665_p3 = por %p68_p2, %p67_p1 }
   0xd   : > { %p32_p4 = scmp.ge.s32.totalorder %s833_s20, 2  ;;  %p73_p5 = scmp.ne.s32.totalorder %s567_s10, %s563_s9 }
   0xe   : > { %p74_p6 = scmp.eq.s32.totalorder %s359_s17, 0  ;;  %p99_p7 = scmp.eq.s32.totalorder %s359_s17, 3 }
   0xf   : > { %s835_s20 = smov (%p32_p4, %s833_s20), 0  ;;  %p105_p10 = scmp.eq.s32.totalorder %s360_s18, 3 }
  0x10   : > { %p673_p8 = por %p74_p6, %p73_p5  ;;  %p677_p9 = por %p99_p7, %p67_p1 }
  0x11   : > { %s55_s26 = ssub.s32 %s587_s15, %s835_s20  ;;  %p683_p12 = por %p105_p10, %p73_p5 }
  0x12   : > { %s816_s25 = scalar_select %p677_p9, 1, 0 }
  0x13   : > { %s57_s27 = sor.u32 %s56_s22, %s55_s26  ;;  %p395_p13 = scmp.lt.s32.totalorder %s591_s16, 4 }
  0x14   : > { %p58_p11 = scmp.eq.s32.totalorder %s57_s27, 0  ;;  %s128_s29 = sand.u32 1, %s571_s11  }
  0x15   : > { %s817_s28 = scalar_select %p683_p12, 1, 0 }
  0x16   : > { %s690_s30 = scalar_select %p58_p11, %s571_s11, %s60_s21  }
  0x17   : > { %s363_s3 = sshll.u32 %s128_s29, 2  ;;  %s364_s4 = sshll.u32 %s587_s15, 1 }
  0x18   : > { %s137_s5 = sadd.s32 %s583_s14, %s364_s4  ;;  %s132_s6 = scalar_lea.vmem [#allocation2], %s363_s3 }
  0x19   : > { %s141_s7 = sshll.u32 %s132_s6, 4  ;;  %s365_s8 = sshll.u32 %s137_s5, 6  ;;  %s694_s7 = int_to_ptr.vmem [resolvable:$true] %s141_s7 }
  0x1a   : > { %s699_s22 = scalar_lea.hbm %s811_s1, %s365_s8  ;;  %p703_p0 = pnand %p395_p13, %p665_p3 }
  0x1b   : > { %s129_s26 = scalar_lea.sflag [#allocation3], %s128_s29  ;;  %s463_s27 = scalar_lea.hbm %s699_s22, 64 }
  0x1c   : > { %p464_p4 = scmp.ne.s32.totalorder %s699_s22, %s463_s27  ;;  %p465_p5 = pneg %p703_p0 }
  0x1d   : > { %s468_s4 = scalar_lea.hbm %s811_s1, 256  ;;  %p469_p3 = scmp.lt.u32.totalorder %s699_s22, %s811_s1 }
  0x1e   : > { %p466_p6 = pnand %p465_p5, %p464_p4  ;;  %p470_p10 = scmp.lt.u32.totalorder %s468_s4, %s463_s27 }
  0x1f   : > { %p472_p13 = scmp.lt.u32.totalorder %s463_s27, %s699_s22 }
  0x20   : > { %p467_p7 = pneg %p466_p6  ;;  %p471_p11 = por %p470_p10, %p469_p3 }
  0x22   : > { %p473_p1 = por %p472_p13, %p471_p11 }
  0x24   : > { %p474_p2 = pnand %p473_p1, %p467_p7 }
  0x26   : > { %477 = shalt.err (!%p474_p2)
}
  0x27   : > { %s478_s29 = scalar_lea.vmem %s694_s7, 64  ;;  %s593_s8 = smov [#allocation2]  }
  0x28   : > { %p479_p4 = scmp.ne.s32.totalorder %s694_s7, %s478_s29  ;;  %s483_s17 = sshll.u32 %s593_s8, 4  ;;  %s484_s17 = int_to_ptr.vmem [resolvable:$false] %s483_s17 }
  0x29   : > { %s485_s18 = scalar_lea.vmem %s484_s17, 128  ;;  %p486_p9 = scmp.lt.s32.totalorder %s694_s7, %s484_s17 }
  0x2a   : > { %p481_p6 = pnand %p479_p4, %p465_p5  ;;  %p487_p3 = scmp.lt.s32.totalorder %s485_s18, %s478_s29 }
  0x2c   : > { %p482_p12 = pneg %p481_p6  ;;  %p488_p10 = por %p487_p3, %p486_p9 }
  0x2e   : > { %p489_p11 = pnand %p488_p10, %p482_p12 }
  0x30   : > { %492 = shalt.err (!%p489_p11)
}
  0x31   : > { %390 = dma.hbm_to_vmem [thread:$0]  (!%p703_p0), %s699_s22, 64, %s694_s7, %s129_s26  }
  0x32   : > { %p819_p1 = scmp.lt.s32.totalorder %s591_s16, 5  ;;  %p820_p2 = scmp.ge.s32.totalorder %s591_s16, 1 }
  0x34   : > { %p147_p5 = pnand %p820_p2, %p819_p1 }
  0x35   : > { %s739_s27 = sand.u32 (!%p147_p5), 1, %s567_s10  }
  0x36   : > { %150 = sbr.rel (%p147_p5) target bundleno = 291 (0x123), region = 28  ;;  %s367_s23 = sshll.u32 (!%p147_p5), %s739_s27, 2 }
  0x37   : > { %s153_s3 = scalar_lea.sflag (!%p147_p5), [#allocation3], %s739_s27  ;;  %s156_s4 = scalar_lea.vmem (!%p147_p5), [#allocation2], %s367_s23 }
  0x3d   : > { %554 = dma.done.wait (%p673_p8), %s153_s3, 64  }
  0x3e   : > { %556 = vsyncadd (%p673_p8), %s153_s3, 4294967232  ;;  %v594_v0 = vmov 0.0   ;;  %vm595_vm0 = vmmov 0   ;;  %vm183_vm1 = vcmask 1043456   ;;  %vm179_vm2 = vcmask 31744   ;;  %v177_v2 = vld [vmem:[%s810_s0] sm:$0xff] }
  0x3f   : > { %378 = vmatprep.subr.mxu0 %v594_v0  ;;  %380 = vmatprep.mubr.msk.f32.mxu0 %vm595_vm0, %v594_v0  ;;  %v178_v1 = vld [vmem:[%s156_s4] sm:$0xf]  ;;  %s368_s24 = sshll.u32 %s739_s27, 3  ;;  %s372_s21 = sshll.u32 %s579_s13, 1 }
  0x40   : > { %379 = vmatpush3.msk.msra.mxu0 %vm183_vm1, %v178_v1  ;;  %s270_s26 = sadd.s32 %s575_s12, %s372_s21  ;;  %s176_s5 = scalar_lea.vmem [#allocation5], %s368_s24 }
  0x41   : > { %381 = vmatmul.mubr.msk.f32.vlgmr.msra.gmra.mrb[0].mxu0 %vm179_vm2, %v177_v2  ;;  %s274_s6 = sshll.u32 %s176_s5, 4  ;;  %s373_s29 = sshll.u32 %s270_s26, 7  ;;  %s753_s6 = int_to_ptr.vmem [resolvable:$true] %s274_s6 }
  0x42   : > { %s758_s18 = scalar_lea.hbm %s812_s2, %s373_s29  ;;  %s259_s23 = scalar_lea.sflag [#allocation4], %s739_s27 }
  0x43   : > { %s493_s3 = scalar_lea.vmem %s753_s6, 128  ;;  %p821_p9 = scmp.ne.s32.totalorder %s816_s25, 0 }
  0x44   : > { %p494_p8 = scmp.ne.s32.totalorder %s753_s6, %s493_s3  ;;  %s596_s12 = smov [#allocation5]  }
  0x45   : > { %s497_s13 = sshll.u32 %s596_s12, 4  ;;  %s498_s13 = int_to_ptr.vmem [resolvable:$false] %s497_s13 }
  0x46   : > { %p495_p12 = pnand %p494_p8, %p821_p9  ;;  %s499_s4 = scalar_lea.vmem %s498_s13, 256 }
  0x47   : > { %p500_p7 = scmp.lt.s32.totalorder %s753_s6, %s498_s13  ;;  %p501_p13 = scmp.lt.s32.totalorder %s499_s4, %s493_s3 }
  0x48   : > { %p496_p0 = pneg %p495_p12 }
  0x49   : > { %p502_p4 = por %p501_p13, %p500_p7 }
  0x4b   : > { %p503_p6 = pnand %p502_p4, %p496_p0 }
 0x114   : > { %v253_v3 = vpop.f32.mrb[0].mxu0 }
 0x115   : > { %257 = vst [vmem:[%s176_s5] sm:$0xff] %v253_v3  ;;  %v382_v4 = vpop.f32.mrb[1].mxu0 }
 0x116   : > { %506 = shalt.err (!%p503_p6)
}
 0x117   : > { %s507_s27 = scalar_lea.hbm %s758_s18, 128  ;;  %s511_s24 = scalar_lea.hbm %s812_s2, 512 }
 0x118   : > { %p508_p3 = scmp.ne.s32.totalorder %s758_s18, %s507_s27  ;;  %p512_p1 = scmp.lt.u32.totalorder %s758_s18, %s812_s2 }
 0x119   : > { %p513_p2 = scmp.lt.u32.totalorder %s511_s24, %s507_s27  ;;  %p515_p8 = scmp.lt.u32.totalorder %s507_s27, %s758_s18 }
 0x11a   : > { %p509_p10 = pnand %p508_p3, %p821_p9 }
 0x11b   : > { %p514_p5 = por %p513_p2, %p512_p1 }
 0x11c   : > { %p510_p11 = pneg %p509_p10 }
 0x11d   : > { %p516_p12 = por %p515_p8, %p514_p5 }
 0x11f   : > { %p517_p0 = pnand %p516_p12, %p510_p11 }
 0x121   : > { %520 = shalt.err (!%p517_p0)
}
 0x122   : > { %385 = dma.vmem_to_hbm [thread:$0]  (%p821_p9), %s753_s6, 128, %s758_s18, %s259_s23  }
 0x123 PF: > { %p396_p7 = scmp.ge.s32.totalorder %s591_s16, 2  ;;  %s286_s5 = sand.u32 1, %s563_s9  }
 0x124   : > { %p822_p13 = scmp.ne.s32.totalorder %s817_s28, 0  ;;  %s287_s29 = scalar_lea.sflag [#allocation4], %s286_s5 }
 0x126   : > { %p392_p4 = pnand %p396_p7, %p822_p13 }
 0x128   : > { %558 = dma.done.wait (!%p392_p4), %s287_s29, 128  }
 0x129   : > { %560 = vsyncadd (!%p392_p4), %s287_s29, 4294967168  ;;  %s18_s16 = sadd.s32 1, %s591_s16   ;;  %s823_s9 = smov %s567_s10 }
 0x12a   : > { %p15_p6 = scmp.ge.s32.totalorder %s18_s16, 6   ;;  %s824_s10 = smov %s571_s11 }
 0x12b   : > { %s825_s11 = smov %s690_s30  ;;  %s826_s12 = smov %s583_s14 }
 0x12c   : > { %s827_s13 = smov %s587_s15  ;;  %s828_s14 = smov %s831_s19 }
 0x12d   : > { %s829_s15 = smov %s835_s20  ;;  %17 = sbr.rel (!%p15_p6) target bundleno = 7 (0x7), region = 73 }
 0x134   :  { %292 = vsyncpa [#allocation3], 1 }
 0x135   :  { %294 = vsyncpa [#allocation3 + $0x1], 1 }
 0x136   :  { %295 = vsyncpa [#allocation4], 1 }
 0x137   :  { %297 = vsyncpa [#allocation4 + $0x1], 1 }

</bundles_post_ra>
